<compile_context>
chip_gen: v7x
topology: tpu7x:2x2x1
jax: 0.10.0
libtpu: 0.0.40
codegen_flags: <defaults>
</compile_context>

<pallas_src>
import functools

import jax
import jax.numpy as jnp
from jax.experimental import pallas as pl
from jax.experimental.pallas import tpu as pltpu


def _ms_dwconv1d_kernel(x_ref, w_ref, b_ref, o_ref, xpad_ref, *, kernel_sizes, true_len):
    # x_ref:    (Bt, Ct, L)     input tile (batch tile x channel tile)
    # w_ref:    (S, Ct, Kmax)   depthwise taps, true taps left-aligned at [0, k)
    # b_ref:    (S, Ct, 1)      per-scale / per-channel bias
    # o_ref:    (Bt, S, Ct, L)  per-scale outputs (caller reshapes to (B, S*C, L))
    # xpad_ref: (Ct, Lp) f32    lane-aligned scratch, zero halo of >= Kmax//2 lanes
    Bt = x_ref.shape[0]
    S, Ct, _ = w_ref.shape
    Lp = xpad_ref.shape[-1]
    k_half = max(kernel_sizes) // 2

    w = w_ref[...].astype(jnp.float32)        # hoisted casts (tiny)
    bias = b_ref[...].astype(jnp.float32)     # (S, Ct, 1)

    for b in range(Bt):                       # static unroll over the batch tile
        # Refresh valid lanes; halo [true_len, Lp) stays zero so every rolled tap
        # reads zeros at the boundaries -> no mask anywhere.
        if Lp > true_len:
            xpad_ref[:, true_len:] = jnp.zeros((Ct, Lp - true_len), jnp.float32)
        xpad_ref[:, :true_len] = x_ref[b].astype(jnp.float32)
        x = xpad_ref[...]                     # (Ct, Lp) f32

        accs = [jnp.zeros((Ct, Lp), jnp.float32) for _ in kernel_sizes]
        # One roll per displacement, shared by every scale that uses it.
        for d in range(-k_half, k_half + 1):
            tap = x if d == 0 else pltpu.roll(x, shift=(-d) % Lp, axis=1)
            for s, k in enumerate(kernel_sizes):
                pad = k // 2
                if abs(d) <= pad:
                    t = d + pad               # tap index, weights left-aligned
                    accs[s] = accs[s] + tap * w[s, :, t:t + 1]

        for s in range(S):
            o_ref[b, s, :, :] = (accs[s][:, :true_len] + bias[s]).astype(o_ref.dtype)


def _divisors(n):
    return [d for d in range(1, n + 1) if n % d == 0]


def _choose_tiles(B, C, L, Lp, S, Kmax, itemsize):
    """Pick (Bt, Ct) so double-buffered blocks + f32 temporaries fit comfortably."""
    def est_bytes(bt, ct):
        blk_in = bt * ct * L * itemsize
        blk_out = bt * S * ct * L * itemsize
        blk_w = S * ct * Kmax * itemsize + S * ct * itemsize
        scratch = ct * Lp * 4
        temps = (S + 2) * ct * Lp * 4         # S accumulators + x + tap (f32)
        return 2 * (blk_in + blk_out + blk_w) + scratch + temps

    budget = 20 * 1024 * 1024
    # Channel tile: prefer full C; otherwise the largest multiple-of-8 divisor
    # (sublane-aligned stores) that fits the budget.
    ct_cands = [C] + sorted((d for d in _divisors(C) if d % 8 == 0 and d != C), reverse=True)
    Ct = next((c for c in ct_cands if est_bytes(1, c) <= budget), ct_cands[-1])
    # Batch tile: amortize ~0.35us/step overhead without blowing VMEM or unroll.
    Bt = 1
    for d in _divisors(B):
        if (d <= 8 and est_bytes(d, Ct) <= budget
                and d * (1 + S) * Ct * L * itemsize <= 4 * 1024 * 1024):
            Bt = d
    return Bt, Ct, est_bytes(Bt, Ct)


@functools.partial(jax.jit, static_argnames=("kernel_sizes",))
def multi_scale_conv1d(x, weights, biases, kernel_sizes):
    """x: (B, C, L); weights: (S, C, Kmax) true taps left-aligned; biases: (S, C, 1).

    Returns (B, S*C, L), equivalent to
    torch.cat([Conv1d(C, C, k, padding=k//2, groups=C)(x) for k in kernel_sizes], dim=1).
    """
    B, C, L = x.shape
    S, _, Kmax = weights.shape
    assert S == len(kernel_sizes)
    assert all(k % 2 == 1 for k in kernel_sizes), "even kernel sizes break 'same' padding"
    assert Kmax == max(kernel_sizes)

    k_half = Kmax // 2
    Lp = ((L + k_half + 127) // 128) * 128    # lane-aligned scratch width incl. zero halo
    itemsize = x.dtype.itemsize

    Bt, Ct, est = _choose_tiles(B, C, L, Lp, S, Kmax, itemsize)
    vmem_limit = int(min(48 * 1024 * 1024, max(32 * 1024 * 1024, 1.5 * est)))

    kernel = functools.partial(
        _ms_dwconv1d_kernel, kernel_sizes=tuple(kernel_sizes), true_len=L)

    cost = pl.CostEstimate(
        flops=2 * B * C * L * sum(kernel_sizes) + B * S * C * L,
        transcendentals=0,
        bytes_accessed=itemsize * (B * C * L + S * C * Kmax + S * C + B * S * C * L),
    )

    out4 = pl.pallas_call(
        kernel,
        out_shape=jax.ShapeDtypeStruct((B, S, C, L), x.dtype),
        grid_spec=pltpu.PrefetchScalarGridSpec(
            num_scalar_prefetch=0,
            grid=(B // Bt, C // Ct),
            in_specs=[
                pl.BlockSpec((Bt, Ct, L), lambda bi, ci: (bi, ci, 0)),       # x tile
                pl.BlockSpec((S, Ct, Kmax), lambda bi, ci: (0, ci, 0)),      # weights
                pl.BlockSpec((S, Ct, 1), lambda bi, ci: (0, ci, 0)),         # biases
            ],
            out_specs=pl.BlockSpec((Bt, S, Ct, L), lambda bi, ci: (bi, 0, ci, 0)),
            scratch_shapes=[pltpu.VMEM((Ct, Lp), jnp.float32)],
        ),
        compiler_params=pltpu.CompilerParams(
            dimension_semantics=("parallel", "parallel"),
            vmem_limit_bytes=vmem_limit,
        ),
        cost_estimate=cost,
    )(x, weights, biases)

    # (B, S, C, L) -> (B, S*C, L): contiguous reshape, no data movement.
    return out4.reshape(B, S * C, L)


def init_params(key, in_channels, kernel_sizes, dtype=jnp.float32):
    """PyTorch-style Conv1d init: weight/bias ~ U(-sqrt(1/k), sqrt(1/k)) (depthwise fan_in=k).

    Per-scale taps are stored left-aligned in a (S, C, Kmax) buffer; the unused zero
    tail is never touched by the kernel.
    """
    assert all(k % 2 == 1 for k in kernel_sizes), "odd kernel sizes required (SCSA default)"
    k_max = max(kernel_sizes)
    w_list, b_list = [], []
    for i, k in enumerate(kernel_sizes):
        kw, kb = jax.random.split(jax.random.fold_in(key, i))
        bound = float(1.0 / (k ** 0.5))
        w = jax.random.uniform(kw, (in_channels, k), dtype, -bound, bound)
        b = jax.random.uniform(kb, (in_channels,), dtype, -bound, bound)
        w_list.append(jnp.pad(w, ((0, 0), (0, k_max - k))))
        b_list.append(b)
    weights = jnp.stack(w_list, axis=0)             # (S, C, Kmax)
    biases = jnp.stack(b_list, axis=0)[..., None]   # (S, C, 1)
    return weights, biases


def _reference(x, weights, biases, kernel_sizes):
    """Pure-JAX reference: torch.cat of per-scale depthwise Conv1d(k, padding=k//2)."""
    B, C, L = x.shape
    outs = []
    for s, k in enumerate(kernel_sizes):
        pad = k // 2
        xp = jnp.pad(x, ((0, 0), (0, 0), (pad, pad))).astype(jnp.float32)
        acc = jnp.zeros((B, C, L), jnp.float32)
        for t in range(k):
            acc = acc + xp[:, :, t:t + L] * weights[s, :, t].astype(jnp.float32)[None, :, None]
        acc = acc + biases[s].astype(jnp.float32)[None]
        outs.append(acc.astype(x.dtype))
    return jnp.concatenate(outs, axis=1)


if __name__ == "__main__":
    B, C, L = 2, 4, 16
    kernel_sizes = (3, 5, 7)   # odd sizes -> "same" length, as in SCSA

    key = jax.random.PRNGKey(0)
    kx, kp = jax.random.split(key)
    x = jax.random.normal(kx, (B, C, L), jnp.float32)
    weights, biases = init_params(kp, C, kernel_sizes)

    out = multi_scale_conv1d(x, weights, biases, kernel_sizes)
    jax.block_until_ready(out)
    assert out.shape == (B, len(kernel_sizes) * C, L), out.shape

    ref = _reference(x, weights, biases, kernel_sizes)
    assert jnp.allclose(out, ref, rtol=1e-5, atol=1e-5), float(jnp.max(jnp.abs(out - ref)))

    print("KERNEL_OK")
</pallas_src>

<mosaic_0001>
module attributes {stable_mosaic.version = 11 : i64} {
  func.func @_ms_dwconv1d_kernel(%arg0: i32, %arg1: i32, %arg2: memref<2x4x16xf32, #tpu.memory_space<vmem>>, %arg3: memref<3x4x7xf32, #tpu.memory_space<vmem>>, %arg4: memref<3x4x1xf32, #tpu.memory_space<vmem>>, %arg5: memref<2x3x4x16xf32, #tpu.memory_space<vmem>>, %arg6: memref<4x128xf32, #tpu.memory_space<vmem>>) attributes {dimension_semantics = [#tpu.dimension_semantics<parallel>, #tpu.dimension_semantics<parallel>], iteration_bounds = array<i64: 1, 1>, scalar_prefetch = 0 : i64, scratch_operands = 1 : i64, tpu.core_type = #tpu.core_type<tc>, window_params = [{transform_indices = @transform_0, window_bounds = array<i64: 2, 4, 16>}, {transform_indices = @transform_1, window_bounds = array<i64: 3, 4, 7>}, {transform_indices = @transform_2, window_bounds = array<i64: 3, 4, 1>}, {transform_indices = @transform_3, window_bounds = array<i64: 2, 3, 4, 16>}]} {
    %c0 = arith.constant 0 : index
    %c0_0 = arith.constant 0 : index
    %c0_1 = arith.constant 0 : index
    %0 = vector.load %arg3[%c0, %c0_0, %c0_1] : memref<3x4x7xf32, #tpu.memory_space<vmem>>, vector<3x4x7xf32>
    %c0_2 = arith.constant 0 : index
    %c0_3 = arith.constant 0 : index
    %c0_4 = arith.constant 0 : index
    %1 = vector.load %arg4[%c0_2, %c0_3, %c0_4] : memref<3x4x1xf32, #tpu.memory_space<vmem>>, vector<3x4x1xf32>
    %cst = arith.constant 0.000000e+00 : f32
    %2 = vector.broadcast %cst : f32 to vector<4x112xf32>
    %c0_5 = arith.constant 0 : index
    %c16 = arith.constant 16 : index
    %3 = vector.load %arg6[%c0_5, %c16] : memref<4x128xf32, #tpu.memory_space<vmem>>, vector<4x112xf32>
    tpu.vector_store %arg6[%c0_5, %c16], %2 {strides = array<i32>} : memref<4x128xf32, #tpu.memory_space<vmem>>, vector<4x112xf32>,
    %c0_6 = arith.constant 0 : index
    %c0_7 = arith.constant 0 : index
    %c0_8 = arith.constant 0 : index
    %4 = vector.load %arg2[%c0_6, %c0_7, %c0_8] : memref<2x4x16xf32, #tpu.memory_space<vmem>>, vector<1x4x16xf32>
    %5 = vector.shape_cast %4 : vector<1x4x16xf32> to vector<4x16xf32>
    %c0_9 = arith.constant 0 : index
    %c0_10 = arith.constant 0 : index
    %6 = vector.load %arg6[%c0_9, %c0_10] : memref<4x128xf32, #tpu.memory_space<vmem>>, vector<4x16xf32>
    tpu.vector_store %arg6[%c0_9, %c0_10], %5 {strides = array<i32>} : memref<4x128xf32, #tpu.memory_space<vmem>>, vector<4x16xf32>,
    %c0_11 = arith.constant 0 : index
    %c0_12 = arith.constant 0 : index
    %7 = vector.load %arg6[%c0_11, %c0_12] : memref<4x128xf32, #tpu.memory_space<vmem>>, vector<4x128xf32>
    %cst_13 = arith.constant 0.000000e+00 : f32
    %8 = vector.broadcast %cst_13 : f32 to vector<4x128xf32>
    %cst_14 = arith.constant 0.000000e+00 : f32
    %9 = vector.broadcast %cst_14 : f32 to vector<4x128xf32>
    %cst_15 = arith.constant 0.000000e+00 : f32
    %10 = vector.broadcast %cst_15 : f32 to vector<4x128xf32>
    %c3_i32 = arith.constant 3 : i32
    %11 = tpu.dynamic_rotate %7 by %c3_i32 dim 1 : vector<4x128xf32>, i32 -> vector<4x128xf32>
    %12 = vector.extract_strided_slice %0 {offsets = [2, 0, 0], sizes = [1, 4, 1], strides = [1, 1, 1]} : vector<3x4x7xf32> to vector<1x4x1xf32>
    %13 = vector.shape_cast %12 : vector<1x4x1xf32> to vector<4x1xf32>
    %14 = vector.broadcast %13 : vector<4x1xf32> to vector<4x128xf32>
    %15 = arith.mulf %11, %14 : vector<4x128xf32>
    %16 = arith.addf %10, %15 : vector<4x128xf32>
    %c2_i32 = arith.constant 2 : i32
    %17 = tpu.dynamic_rotate %7 by %c2_i32 dim 1 : vector<4x128xf32>, i32 -> vector<4x128xf32>
    %18 = vector.extract_strided_slice %0 {offsets = [1, 0, 0], sizes = [1, 4, 1], strides = [1, 1, 1]} : vector<3x4x7xf32> to vector<1x4x1xf32>
    %19 = vector.shape_cast %18 : vector<1x4x1xf32> to vector<4x1xf32>
    %20 = vector.broadcast %19 : vector<4x1xf32> to vector<4x128xf32>
    %21 = arith.mulf %17, %20 : vector<4x128xf32>
    %22 = arith.addf %9, %21 : vector<4x128xf32>
    %23 = vector.extract_strided_slice %0 {offsets = [2, 0, 1], sizes = [1, 4, 1], strides = [1, 1, 1]} : vector<3x4x7xf32> to vector<1x4x1xf32>
    %24 = vector.shape_cast %23 : vector<1x4x1xf32> to vector<4x1xf32>
    %25 = vector.broadcast %24 : vector<4x1xf32> to vector<4x128xf32>
    %26 = arith.mulf %17, %25 : vector<4x128xf32>
    %27 = arith.addf %16, %26 : vector<4x128xf32>
    %c1_i32 = arith.constant 1 : i32
    %28 = tpu.dynamic_rotate %7 by %c1_i32 dim 1 : vector<4x128xf32>, i32 -> vector<4x128xf32>
    %29 = vector.extract_strided_slice %0 {offsets = [0, 0, 0], sizes = [1, 4, 1], strides = [1, 1, 1]} : vector<3x4x7xf32> to vector<1x4x1xf32>
    %30 = vector.shape_cast %29 : vector<1x4x1xf32> to vector<4x1xf32>
    %31 = vector.broadcast %30 : vector<4x1xf32> to vector<4x128xf32>
    %32 = arith.mulf %28, %31 : vector<4x128xf32>
    %33 = arith.addf %8, %32 : vector<4x128xf32>
    %34 = vector.extract_strided_slice %0 {offsets = [1, 0, 1], sizes = [1, 4, 1], strides = [1, 1, 1]} : vector<3x4x7xf32> to vector<1x4x1xf32>
    %35 = vector.shape_cast %34 : vector<1x4x1xf32> to vector<4x1xf32>
    %36 = vector.broadcast %35 : vector<4x1xf32> to vector<4x128xf32>
    %37 = arith.mulf %28, %36 : vector<4x128xf32>
    %38 = arith.addf %22, %37 : vector<4x128xf32>
    %39 = vector.extract_strided_slice %0 {offsets = [2, 0, 2], sizes = [1, 4, 1], strides = [1, 1, 1]} : vector<3x4x7xf32> to vector<1x4x1xf32>
    %40 = vector.shape_cast %39 : vector<1x4x1xf32> to vector<4x1xf32>
    %41 = vector.broadcast %40 : vector<4x1xf32> to vector<4x128xf32>
    %42 = arith.mulf %28, %41 : vector<4x128xf32>
    %43 = arith.addf %27, %42 : vector<4x128xf32>
    %44 = vector.extract_strided_slice %0 {offsets = [0, 0, 1], sizes = [1, 4, 1], strides = [1, 1, 1]} : vector<3x4x7xf32> to vector<1x4x1xf32>
    %45 = vector.shape_cast %44 : vector<1x4x1xf32> to vector<4x1xf32>
    %46 = vector.broadcast %45 : vector<4x1xf32> to vector<4x128xf32>
    %47 = arith.mulf %7, %46 : vector<4x128xf32>
    %48 = arith.addf %33, %47 : vector<4x128xf32>
    %49 = vector.extract_strided_slice %0 {offsets = [1, 0, 2], sizes = [1, 4, 1], strides = [1, 1, 1]} : vector<3x4x7xf32> to vector<1x4x1xf32>
    %50 = vector.shape_cast %49 : vector<1x4x1xf32> to vector<4x1xf32>
    %51 = vector.broadcast %50 : vector<4x1xf32> to vector<4x128xf32>
    %52 = arith.mulf %7, %51 : vector<4x128xf32>
    %53 = arith.addf %38, %52 : vector<4x128xf32>
    %54 = vector.extract_strided_slice %0 {offsets = [2, 0, 3], sizes = [1, 4, 1], strides = [1, 1, 1]} : vector<3x4x7xf32> to vector<1x4x1xf32>
    %55 = vector.shape_cast %54 : vector<1x4x1xf32> to vector<4x1xf32>
    %56 = vector.broadcast %55 : vector<4x1xf32> to vector<4x128xf32>
    %57 = arith.mulf %7, %56 : vector<4x128xf32>
    %58 = arith.addf %43, %57 : vector<4x128xf32>
    %c127_i32 = arith.constant 127 : i32
    %59 = tpu.dynamic_rotate %7 by %c127_i32 dim 1 : vector<4x128xf32>, i32 -> vector<4x128xf32>
    %60 = vector.extract_strided_slice %0 {offsets = [0, 0, 2], sizes = [1, 4, 1], strides = [1, 1, 1]} : vector<3x4x7xf32> to vector<1x4x1xf32>
    %61 = vector.shape_cast %60 : vector<1x4x1xf32> to vector<4x1xf32>
    %62 = vector.broadcast %61 : vector<4x1xf32> to vector<4x128xf32>
    %63 = arith.mulf %59, %62 : vector<4x128xf32>
    %64 = arith.addf %48, %63 : vector<4x128xf32>
    %65 = vector.extract_strided_slice %0 {offsets = [1, 0, 3], sizes = [1, 4, 1], strides = [1, 1, 1]} : vector<3x4x7xf32> to vector<1x4x1xf32>
    %66 = vector.shape_cast %65 : vector<1x4x1xf32> to vector<4x1xf32>
    %67 = vector.broadcast %66 : vector<4x1xf32> to vector<4x128xf32>
    %68 = arith.mulf %59, %67 : vector<4x128xf32>
    %69 = arith.addf %53, %68 : vector<4x128xf32>
    %70 = vector.extract_strided_slice %0 {offsets = [2, 0, 4], sizes = [1, 4, 1], strides = [1, 1, 1]} : vector<3x4x7xf32> to vector<1x4x1xf32>
    %71 = vector.shape_cast %70 : vector<1x4x1xf32> to vector<4x1xf32>
    %72 = vector.broadcast %71 : vector<4x1xf32> to vector<4x128xf32>
    %73 = arith.mulf %59, %72 : vector<4x128xf32>
    %74 = arith.addf %58, %73 : vector<4x128xf32>
    %c126_i32 = arith.constant 126 : i32
    %75 = tpu.dynamic_rotate %7 by %c126_i32 dim 1 : vector<4x128xf32>, i32 -> vector<4x128xf32>
    %76 = vector.extract_strided_slice %0 {offsets = [1, 0, 4], sizes = [1, 4, 1], strides = [1, 1, 1]} : vector<3x4x7xf32> to vector<1x4x1xf32>
    %77 = vector.shape_cast %76 : vector<1x4x1xf32> to vector<4x1xf32>
    %78 = vector.broadcast %77 : vector<4x1xf32> to vector<4x128xf32>
    %79 = arith.mulf %75, %78 : vector<4x128xf32>
    %80 = arith.addf %69, %79 : vector<4x128xf32>
    %81 = vector.extract_strided_slice %0 {offsets = [2, 0, 5], sizes = [1, 4, 1], strides = [1, 1, 1]} : vector<3x4x7xf32> to vector<1x4x1xf32>
    %82 = vector.shape_cast %81 : vector<1x4x1xf32> to vector<4x1xf32>
    %83 = vector.broadcast %82 : vector<4x1xf32> to vector<4x128xf32>
    %84 = arith.mulf %75, %83 : vector<4x128xf32>
    %85 = arith.addf %74, %84 : vector<4x128xf32>
    %c125_i32 = arith.constant 125 : i32
    %86 = tpu.dynamic_rotate %7 by %c125_i32 dim 1 : vector<4x128xf32>, i32 -> vector<4x128xf32>
    %87 = vector.extract_strided_slice %0 {offsets = [2, 0, 6], sizes = [1, 4, 1], strides = [1, 1, 1]} : vector<3x4x7xf32> to vector<1x4x1xf32>
    %88 = vector.shape_cast %87 : vector<1x4x1xf32> to vector<4x1xf32>
    %89 = vector.broadcast %88 : vector<4x1xf32> to vector<4x128xf32>
    %90 = arith.mulf %86, %89 : vector<4x128xf32>
    %91 = arith.addf %85, %90 : vector<4x128xf32>
    %92 = vector.extract_strided_slice %64 {offsets = [0, 0], sizes = [4, 16], strides = [1, 1]} : vector<4x128xf32> to vector<4x16xf32>
    %93 = vector.extract_strided_slice %1 {offsets = [0, 0, 0], sizes = [1, 4, 1], strides = [1, 1, 1]} : vector<3x4x1xf32> to vector<1x4x1xf32>
    %94 = vector.shape_cast %93 : vector<1x4x1xf32> to vector<4x1xf32>
    %95 = vector.broadcast %94 : vector<4x1xf32> to vector<4x16xf32>
    %96 = arith.addf %92, %95 : vector<4x16xf32>
    %c0_16 = arith.constant 0 : index
    %c0_17 = arith.constant 0 : index
    %c0_18 = arith.constant 0 : index
    %c0_19 = arith.constant 0 : index
    %97 = vector.load %arg5[%c0_16, %c0_17, %c0_18, %c0_19] : memref<2x3x4x16xf32, #tpu.memory_space<vmem>>, vector<1x1x4x16xf32>
    %98 = vector.shape_cast %97 : vector<1x1x4x16xf32> to vector<4x16xf32>
    %99 = vector.shape_cast %96 : vector<4x16xf32> to vector<1x1x4x16xf32>
    tpu.vector_store %arg5[%c0_16, %c0_17, %c0_18, %c0_19], %99 {strides = array<i32>} : memref<2x3x4x16xf32, #tpu.memory_space<vmem>>, vector<1x1x4x16xf32>,
    %100 = vector.extract_strided_slice %80 {offsets = [0, 0], sizes = [4, 16], strides = [1, 1]} : vector<4x128xf32> to vector<4x16xf32>
    %101 = vector.extract_strided_slice %1 {offsets = [1, 0, 0], sizes = [1, 4, 1], strides = [1, 1, 1]} : vector<3x4x1xf32> to vector<1x4x1xf32>
    %102 = vector.shape_cast %101 : vector<1x4x1xf32> to vector<4x1xf32>
    %103 = vector.broadcast %102 : vector<4x1xf32> to vector<4x16xf32>
    %104 = arith.addf %100, %103 : vector<4x16xf32>
    %c0_20 = arith.constant 0 : index
    %c1 = arith.constant 1 : index
    %c0_21 = arith.constant 0 : index
    %c0_22 = arith.constant 0 : index
    %105 = vector.load %arg5[%c0_20, %c1, %c0_21, %c0_22] : memref<2x3x4x16xf32, #tpu.memory_space<vmem>>, vector<1x1x4x16xf32>
    %106 = vector.shape_cast %105 : vector<1x1x4x16xf32> to vector<4x16xf32>
    %107 = vector.shape_cast %104 : vector<4x16xf32> to vector<1x1x4x16xf32>
    tpu.vector_store %arg5[%c0_20, %c1, %c0_21, %c0_22], %107 {strides = array<i32>} : memref<2x3x4x16xf32, #tpu.memory_space<vmem>>, vector<1x1x4x16xf32>,
    %108 = vector.extract_strided_slice %91 {offsets = [0, 0], sizes = [4, 16], strides = [1, 1]} : vector<4x128xf32> to vector<4x16xf32>
    %109 = vector.extract_strided_slice %1 {offsets = [2, 0, 0], sizes = [1, 4, 1], strides = [1, 1, 1]} : vector<3x4x1xf32> to vector<1x4x1xf32>
    %110 = vector.shape_cast %109 : vector<1x4x1xf32> to vector<4x1xf32>
    %111 = vector.broadcast %110 : vector<4x1xf32> to vector<4x16xf32>
    %112 = arith.addf %108, %111 : vector<4x16xf32>
    %c0_23 = arith.constant 0 : index
    %c2 = arith.constant 2 : index
    %c0_24 = arith.constant 0 : index
    %c0_25 = arith.constant 0 : index
    %113 = vector.load %arg5[%c0_23, %c2, %c0_24, %c0_25] : memref<2x3x4x16xf32, #tpu.memory_space<vmem>>, vector<1x1x4x16xf32>
    %114 = vector.shape_cast %113 : vector<1x1x4x16xf32> to vector<4x16xf32>
    %115 = vector.shape_cast %112 : vector<4x16xf32> to vector<1x1x4x16xf32>
    tpu.vector_store %arg5[%c0_23, %c2, %c0_24, %c0_25], %115 {strides = array<i32>} : memref<2x3x4x16xf32, #tpu.memory_space<vmem>>, vector<1x1x4x16xf32>,
    %cst_26 = arith.constant 0.000000e+00 : f32
    %116 = vector.broadcast %cst_26 : f32 to vector<4x112xf32>
    %c0_27 = arith.constant 0 : index
    %c16_28 = arith.constant 16 : index
    %117 = vector.load %arg6[%c0_27, %c16_28] : memref<4x128xf32, #tpu.memory_space<vmem>>, vector<4x112xf32>
    tpu.vector_store %arg6[%c0_27, %c16_28], %116 {strides = array<i32>} : memref<4x128xf32, #tpu.memory_space<vmem>>, vector<4x112xf32>,
    %c1_29 = arith.constant 1 : index
    %c0_30 = arith.constant 0 : index
    %c0_31 = arith.constant 0 : index
    %118 = vector.load %arg2[%c1_29, %c0_30, %c0_31] : memref<2x4x16xf32, #tpu.memory_space<vmem>>, vector<1x4x16xf32>
    %119 = vector.shape_cast %118 : vector<1x4x16xf32> to vector<4x16xf32>
    %c0_32 = arith.constant 0 : index
    %c0_33 = arith.constant 0 : index
    %120 = vector.load %arg6[%c0_32, %c0_33] : memref<4x128xf32, #tpu.memory_space<vmem>>, vector<4x16xf32>
    tpu.vector_store %arg6[%c0_32, %c0_33], %119 {strides = array<i32>} : memref<4x128xf32, #tpu.memory_space<vmem>>, vector<4x16xf32>,
    %c0_34 = arith.constant 0 : index
    %c0_35 = arith.constant 0 : index
    %121 = vector.load %arg6[%c0_34, %c0_35] : memref<4x128xf32, #tpu.memory_space<vmem>>, vector<4x128xf32>
    %cst_36 = arith.constant 0.000000e+00 : f32
    %122 = vector.broadcast %cst_36 : f32 to vector<4x128xf32>
    %cst_37 = arith.constant 0.000000e+00 : f32
    %123 = vector.broadcast %cst_37 : f32 to vector<4x128xf32>
    %cst_38 = arith.constant 0.000000e+00 : f32
    %124 = vector.broadcast %cst_38 : f32 to vector<4x128xf32>
    %c3_i32_39 = arith.constant 3 : i32
    %125 = tpu.dynamic_rotate %121 by %c3_i32_39 dim 1 : vector<4x128xf32>, i32 -> vector<4x128xf32>
    %126 = vector.extract_strided_slice %0 {offsets = [2, 0, 0], sizes = [1, 4, 1], strides = [1, 1, 1]} : vector<3x4x7xf32> to vector<1x4x1xf32>
    %127 = vector.shape_cast %126 : vector<1x4x1xf32> to vector<4x1xf32>
    %128 = vector.broadcast %127 : vector<4x1xf32> to vector<4x128xf32>
    %129 = arith.mulf %125, %128 : vector<4x128xf32>
    %130 = arith.addf %124, %129 : vector<4x128xf32>
    %c2_i32_40 = arith.constant 2 : i32
    %131 = tpu.dynamic_rotate %121 by %c2_i32_40 dim 1 : vector<4x128xf32>, i32 -> vector<4x128xf32>
    %132 = vector.extract_strided_slice %0 {offsets = [1, 0, 0], sizes = [1, 4, 1], strides = [1, 1, 1]} : vector<3x4x7xf32> to vector<1x4x1xf32>
    %133 = vector.shape_cast %132 : vector<1x4x1xf32> to vector<4x1xf32>
    %134 = vector.broadcast %133 : vector<4x1xf32> to vector<4x128xf32>
    %135 = arith.mulf %131, %134 : vector<4x128xf32>
    %136 = arith.addf %123, %135 : vector<4x128xf32>
    %137 = vector.extract_strided_slice %0 {offsets = [2, 0, 1], sizes = [1, 4, 1], strides = [1, 1, 1]} : vector<3x4x7xf32> to vector<1x4x1xf32>
    %138 = vector.shape_cast %137 : vector<1x4x1xf32> to vector<4x1xf32>
    %139 = vector.broadcast %138 : vector<4x1xf32> to vector<4x128xf32>
    %140 = arith.mulf %131, %139 : vector<4x128xf32>
    %141 = arith.addf %130, %140 : vector<4x128xf32>
    %c1_i32_41 = arith.constant 1 : i32
    %142 = tpu.dynamic_rotate %121 by %c1_i32_41 dim 1 : vector<4x128xf32>, i32 -> vector<4x128xf32>
    %143 = vector.extract_strided_slice %0 {offsets = [0, 0, 0], sizes = [1, 4, 1], strides = [1, 1, 1]} : vector<3x4x7xf32> to vector<1x4x1xf32>
    %144 = vector.shape_cast %143 : vector<1x4x1xf32> to vector<4x1xf32>
    %145 = vector.broadcast %144 : vector<4x1xf32> to vector<4x128xf32>
    %146 = arith.mulf %142, %145 : vector<4x128xf32>
    %147 = arith.addf %122, %146 : vector<4x128xf32>
    %148 = vector.extract_strided_slice %0 {offsets = [1, 0, 1], sizes = [1, 4, 1], strides = [1, 1, 1]} : vector<3x4x7xf32> to vector<1x4x1xf32>
    %149 = vector.shape_cast %148 : vector<1x4x1xf32> to vector<4x1xf32>
    %150 = vector.broadcast %149 : vector<4x1xf32> to vector<4x128xf32>
    %151 = arith.mulf %142, %150 : vector<4x128xf32>
    %152 = arith.addf %136, %151 : vector<4x128xf32>
    %153 = vector.extract_strided_slice %0 {offsets = [2, 0, 2], sizes = [1, 4, 1], strides = [1, 1, 1]} : vector<3x4x7xf32> to vector<1x4x1xf32>
    %154 = vector.shape_cast %153 : vector<1x4x1xf32> to vector<4x1xf32>
    %155 = vector.broadcast %154 : vector<4x1xf32> to vector<4x128xf32>
    %156 = arith.mulf %142, %155 : vector<4x128xf32>
    %157 = arith.addf %141, %156 : vector<4x128xf32>
    %158 = vector.extract_strided_slice %0 {offsets = [0, 0, 1], sizes = [1, 4, 1], strides = [1, 1, 1]} : vector<3x4x7xf32> to vector<1x4x1xf32>
    %159 = vector.shape_cast %158 : vector<1x4x1xf32> to vector<4x1xf32>
    %160 = vector.broadcast %159 : vector<4x1xf32> to vector<4x128xf32>
    %161 = arith.mulf %121, %160 : vector<4x128xf32>
    %162 = arith.addf %147, %161 : vector<4x128xf32>
    %163 = vector.extract_strided_slice %0 {offsets = [1, 0, 2], sizes = [1, 4, 1], strides = [1, 1, 1]} : vector<3x4x7xf32> to vector<1x4x1xf32>
    %164 = vector.shape_cast %163 : vector<1x4x1xf32> to vector<4x1xf32>
    %165 = vector.broadcast %164 : vector<4x1xf32> to vector<4x128xf32>
    %166 = arith.mulf %121, %165 : vector<4x128xf32>
    %167 = arith.addf %152, %166 : vector<4x128xf32>
    %168 = vector.extract_strided_slice %0 {offsets = [2, 0, 3], sizes = [1, 4, 1], strides = [1, 1, 1]} : vector<3x4x7xf32> to vector<1x4x1xf32>
    %169 = vector.shape_cast %168 : vector<1x4x1xf32> to vector<4x1xf32>
    %170 = vector.broadcast %169 : vector<4x1xf32> to vector<4x128xf32>
    %171 = arith.mulf %121, %170 : vector<4x128xf32>
    %172 = arith.addf %157, %171 : vector<4x128xf32>
    %c127_i32_42 = arith.constant 127 : i32
    %173 = tpu.dynamic_rotate %121 by %c127_i32_42 dim 1 : vector<4x128xf32>, i32 -> vector<4x128xf32>
    %174 = vector.extract_strided_slice %0 {offsets = [0, 0, 2], sizes = [1, 4, 1], strides = [1, 1, 1]} : vector<3x4x7xf32> to vector<1x4x1xf32>
    %175 = vector.shape_cast %174 : vector<1x4x1xf32> to vector<4x1xf32>
    %176 = vector.broadcast %175 : vector<4x1xf32> to vector<4x128xf32>
    %177 = arith.mulf %173, %176 : vector<4x128xf32>
    %178 = arith.addf %162, %177 : vector<4x128xf32>
    %179 = vector.extract_strided_slice %0 {offsets = [1, 0, 3], sizes = [1, 4, 1], strides = [1, 1, 1]} : vector<3x4x7xf32> to vector<1x4x1xf32>
    %180 = vector.shape_cast %179 : vector<1x4x1xf32> to vector<4x1xf32>
    %181 = vector.broadcast %180 : vector<4x1xf32> to vector<4x128xf32>
    %182 = arith.mulf %173, %181 : vector<4x128xf32>
    %183 = arith.addf %167, %182 : vector<4x128xf32>
    %184 = vector.extract_strided_slice %0 {offsets = [2, 0, 4], sizes = [1, 4, 1], strides = [1, 1, 1]} : vector<3x4x7xf32> to vector<1x4x1xf32>
    %185 = vector.shape_cast %184 : vector<1x4x1xf32> to vector<4x1xf32>
    %186 = vector.broadcast %185 : vector<4x1xf32> to vector<4x128xf32>
    %187 = arith.mulf %173, %186 : vector<4x128xf32>
    %188 = arith.addf %172, %187 : vector<4x128xf32>
    %c126_i32_43 = arith.constant 126 : i32
    %189 = tpu.dynamic_rotate %121 by %c126_i32_43 dim 1 : vector<4x128xf32>, i32 -> vector<4x128xf32>
    %190 = vector.extract_strided_slice %0 {offsets = [1, 0, 4], sizes = [1, 4, 1], strides = [1, 1, 1]} : vector<3x4x7xf32> to vector<1x4x1xf32>
    %191 = vector.shape_cast %190 : vector<1x4x1xf32> to vector<4x1xf32>
    %192 = vector.broadcast %191 : vector<4x1xf32> to vector<4x128xf32>
    %193 = arith.mulf %189, %192 : vector<4x128xf32>
    %194 = arith.addf %183, %193 : vector<4x128xf32>
    %195 = vector.extract_strided_slice %0 {offsets = [2, 0, 5], sizes = [1, 4, 1], strides = [1, 1, 1]} : vector<3x4x7xf32> to vector<1x4x1xf32>
    %196 = vector.shape_cast %195 : vector<1x4x1xf32> to vector<4x1xf32>
    %197 = vector.broadcast %196 : vector<4x1xf32> to vector<4x128xf32>
    %198 = arith.mulf %189, %197 : vector<4x128xf32>
    %199 = arith.addf %188, %198 : vector<4x128xf32>
    %c125_i32_44 = arith.constant 125 : i32
    %200 = tpu.dynamic_rotate %121 by %c125_i32_44 dim 1 : vector<4x128xf32>, i32 -> vector<4x128xf32>
    %201 = vector.extract_strided_slice %0 {offsets = [2, 0, 6], sizes = [1, 4, 1], strides = [1, 1, 1]} : vector<3x4x7xf32> to vector<1x4x1xf32>
    %202 = vector.shape_cast %201 : vector<1x4x1xf32> to vector<4x1xf32>
    %203 = vector.broadcast %202 : vector<4x1xf32> to vector<4x128xf32>
    %204 = arith.mulf %200, %203 : vector<4x128xf32>
    %205 = arith.addf %199, %204 : vector<4x128xf32>
    %206 = vector.extract_strided_slice %178 {offsets = [0, 0], sizes = [4, 16], strides = [1, 1]} : vector<4x128xf32> to vector<4x16xf32>
    %207 = vector.extract_strided_slice %1 {offsets = [0, 0, 0], sizes = [1, 4, 1], strides = [1, 1, 1]} : vector<3x4x1xf32> to vector<1x4x1xf32>
    %208 = vector.shape_cast %207 : vector<1x4x1xf32> to vector<4x1xf32>
    %209 = vector.broadcast %208 : vector<4x1xf32> to vector<4x16xf32>
    %210 = arith.addf %206, %209 : vector<4x16xf32>
    %c1_45 = arith.constant 1 : index
    %c0_46 = arith.constant 0 : index
    %c0_47 = arith.constant 0 : index
    %c0_48 = arith.constant 0 : index
    %211 = vector.load %arg5[%c1_45, %c0_46, %c0_47, %c0_48] : memref<2x3x4x16xf32, #tpu.memory_space<vmem>>, vector<1x1x4x16xf32>
    %212 = vector.shape_cast %211 : vector<1x1x4x16xf32> to vector<4x16xf32>
    %213 = vector.shape_cast %210 : vector<4x16xf32> to vector<1x1x4x16xf32>
    tpu.vector_store %arg5[%c1_45, %c0_46, %c0_47, %c0_48], %213 {strides = array<i32>} : memref<2x3x4x16xf32, #tpu.memory_space<vmem>>, vector<1x1x4x16xf32>,
    %214 = vector.extract_strided_slice %194 {offsets = [0, 0], sizes = [4, 16], strides = [1, 1]} : vector<4x128xf32> to vector<4x16xf32>
    %215 = vector.extract_strided_slice %1 {offsets = [1, 0, 0], sizes = [1, 4, 1], strides = [1, 1, 1]} : vector<3x4x1xf32> to vector<1x4x1xf32>
    %216 = vector.shape_cast %215 : vector<1x4x1xf32> to vector<4x1xf32>
    %217 = vector.broadcast %216 : vector<4x1xf32> to vector<4x16xf32>
    %218 = arith.addf %214, %217 : vector<4x16xf32>
    %c1_49 = arith.constant 1 : index
    %c1_50 = arith.constant 1 : index
    %c0_51 = arith.constant 0 : index
    %c0_52 = arith.constant 0 : index
    %219 = vector.load %arg5[%c1_49, %c1_50, %c0_51, %c0_52] : memref<2x3x4x16xf32, #tpu.memory_space<vmem>>, vector<1x1x4x16xf32>
    %220 = vector.shape_cast %219 : vector<1x1x4x16xf32> to vector<4x16xf32>
    %221 = vector.shape_cast %218 : vector<4x16xf32> to vector<1x1x4x16xf32>
    tpu.vector_store %arg5[%c1_49, %c1_50, %c0_51, %c0_52], %221 {strides = array<i32>} : memref<2x3x4x16xf32, #tpu.memory_space<vmem>>, vector<1x1x4x16xf32>,
    %222 = vector.extract_strided_slice %205 {offsets = [0, 0], sizes = [4, 16], strides = [1, 1]} : vector<4x128xf32> to vector<4x16xf32>
    %223 = vector.extract_strided_slice %1 {offsets = [2, 0, 0], sizes = [1, 4, 1], strides = [1, 1, 1]} : vector<3x4x1xf32> to vector<1x4x1xf32>
    %224 = vector.shape_cast %223 : vector<1x4x1xf32> to vector<4x1xf32>
    %225 = vector.broadcast %224 : vector<4x1xf32> to vector<4x16xf32>
    %226 = arith.addf %222, %225 : vector<4x16xf32>
    %c1_53 = arith.constant 1 : index
    %c2_54 = arith.constant 2 : index
    %c0_55 = arith.constant 0 : index
    %c0_56 = arith.constant 0 : index
    %227 = vector.load %arg5[%c1_53, %c2_54, %c0_55, %c0_56] : memref<2x3x4x16xf32, #tpu.memory_space<vmem>>, vector<1x1x4x16xf32>
    %228 = vector.shape_cast %227 : vector<1x1x4x16xf32> to vector<4x16xf32>
    %229 = vector.shape_cast %226 : vector<4x16xf32> to vector<1x1x4x16xf32>
    tpu.vector_store %arg5[%c1_53, %c2_54, %c0_55, %c0_56], %229 {strides = array<i32>} : memref<2x3x4x16xf32, #tpu.memory_space<vmem>>, vector<1x1x4x16xf32>,
    return
  }
  func.func @transform_0(%arg0: i32, %arg1: i32) -> (i32, i32, i32) {
    %c0_i32 = arith.constant 0 : i32
    %c0_i32_0 = arith.constant 0 : i32
    return %arg0, %arg1, %c0_i32 : i32, i32, i32
  }
  func.func @transform_1(%arg0: i32, %arg1: i32) -> (i32, i32, i32) {
    %c0_i32 = arith.constant 0 : i32
    %c0_i32_0 = arith.constant 0 : i32
    %c0_i32_1 = arith.constant 0 : i32
    return %c0_i32, %arg1, %c0_i32_0 : i32, i32, i32
  }
  func.func @transform_2(%arg0: i32, %arg1: i32) -> (i32, i32, i32) {
    %c0_i32 = arith.constant 0 : i32
    %c0_i32_0 = arith.constant 0 : i32
    %c0_i32_1 = arith.constant 0 : i32
    return %c0_i32, %arg1, %c0_i32_0 : i32, i32, i32
  }
  func.func @transform_3(%arg0: i32, %arg1: i32) -> (i32, i32, i32, i32) {
    %c0_i32 = arith.constant 0 : i32
    %c0_i32_0 = arith.constant 0 : i32
    %c0_i32_1 = arith.constant 0 : i32
    return %arg0, %c0_i32, %arg1, %c0_i32_0 : i32, i32, i32, i32
  }
}

</mosaic_0001>

<bundles_post_ra>
// kernel: multi_scale_conv1d.1
= control target key start
LH: loop header
LB: loop body
LE: loop exit
PB: predicated region body
PF: predicated region fallthrough
CT: control target
= control target key end

     0   :  { %8 = vsyncpa [#allocation4], 0  ;;  %s289_s12 = smov [#allocation3]   ;;  %s437_s0 = inlined_call_operand.hbm [shape: f32[2,4,16], index: 0, kind: input, shape index: {}]   ;;  %s438_s1 = inlined_call_operand.vmem [shape: f32[3,4,7], index: 1, kind: input, shape index: {}]   ;;  %s439_s2 = inlined_call_operand.vmem [shape: f32[3,4,1], index: 2, kind: input, shape index: {}]   ;;  %s440_s3 = inlined_call_operand.vmem [shape: f32[2,3,4,16], index: 3, kind: output, shape index: {}]  }
   0x1   :  { %s14_s13 = sshll.u32 %s289_s12, 4  ;;  %s265_s16 = scalar_lea.hbm %s437_s0, 128  ;;  %s15_s13 = int_to_ptr.vmem [resolvable:$true] %s14_s13 }
   0x2   :  { %p266_p0 = scmp.ne.s32.totalorder %s437_s0, %s265_s16  ;;  %p269_p1 = scmp.lt.u32.totalorder %s265_s16, %s437_s0 }
   0x4   :  { %p271_p2 = pnand %p269_p1, %p266_p0 }
   0x6   :  { %274 = shalt.err (!%p271_p2)
}
   0x7   :  { %s275_s21 = scalar_lea.vmem %s15_s13, 128  ;;  %p280_p4 = scmp.lt.s32.totalorder %s15_s13, %s15_s13 }
   0x8   :  { %p276_p3 = scmp.ne.s32.totalorder %s15_s13, %s275_s21  ;;  %p281_p5 = scmp.lt.s32.totalorder %s275_s21, %s275_s21 }
   0xa   :  { %p282_p6 = por %p281_p5, %p280_p4 }
   0xc   :  { %p283_p7 = pnand %p282_p6, %p276_p3 }
   0xe   :  { %286 = shalt.err (!%p283_p7)
}
   0xf   :  { %s290_s22 = smov 64   ;;  %s291_s23 = smov 4  }
  0x10   :  { %20 = dma.hbm_to_vmem [thread:$0]  %s437_s0, 128, %s15_s13, [#allocation4], %s290_s22, %s290_s22, %s291_s23  }
  0x11   :  { %287 = dma.done.wait [#allocation4], 128  }
  0x12   :  { %288 = vsyncadd [#allocation4], 4294967168  ;;  %vm34_vm0 = vcmask 1043584   ;;  %v292_v0 = vmov 0   ;;  %v293_v1 = vmov 1   ;;  %v294_v2 = vmov 0.0  }
  0x13   :  { %251 = vset.pattern.permute.xlu1 %v292_v0  ;;  %254 = vset.pattern.permute.xlu0 %v293_v1  ;;  %35 = vst.msk [vmem:[#allocation2] sm:$0xf] %vm34_vm0, %v294_v2  ;;  %vm37_vm1 = vcmask 125952   ;;  %v29_v3 = vld [vmem:[%s438_s1 + $0x4] sm:$0xf]  ;;  %v295_v6 = vmov 5  }
  0x14   :  { %v36_v4 = vld [vmem:[#allocation3] sm:$0xf]  ;;  %53 = vperm.xlu1 %251, %v29_v3   ;;  %74 = vperm.xlu0 %254, %v29_v3   ;;  %v30_v5 = vld [vmem:[%s438_s1 + $0x8] sm:$0xf]  ;;  %s296_s29 = smov 3   ;;  %v297_v9 = vmov 2  }
  0x15   :  { %38 = vst.msk [vmem:[#allocation2] sm:$0xf] %vm37_vm1, %v36_v4  ;;  %v170_v7 = vld [vmem:[#allocation3 + $0x4] sm:$0xf]  ;;  %s298_s30 = smov 1   ;;  %v299_v10 = vmov 3  }
  0x16   :  { %s300_s4 = smov 2   ;;  %v301_v11 = vmov 4   ;;  %v28_v13 = vld [vmem:[%s438_s1] sm:$0xf]  ;;  %s302_s7 = smov 127   ;;  %v305_v15 = vmov 6  }
  0x17   :  { %v32_v14 = vld [vmem:[%s439_s2 + $0x4] sm:$0xf]  ;;  %s303_s10 = smov 126   ;;  %s304_s1 = smov 125   ;;  %v31_v16 = vld [vmem:[%s439_s2] sm:$0xf] }
  0x18   :  { %252 = vset.pattern.permute.xlu1 %v293_v1  ;;  %259 = vset.pattern.permute.xlu0 %v295_v6  ;;  %v33_v17 = vld [vmem:[%s439_s2 + $0x8] sm:$0xf] }
  0x19   :  { %59 = vperm.xlu1 %252, %v30_v5  }
  0x1c   :  { %v347_v8 = vld [vmem:[#allocation2] sm:$0xf] }
  0x1d   :  { %40 = vrot.lane.b32.xlu0 %v347_v8, %s296_s29  ;;  %168 = vst.msk [vmem:[#allocation2] sm:$0xf] %vm34_vm0, %v294_v2  ;;  %253 = vset.pattern.permute.xlu1 %v297_v9 }
  0x1e   :  { %171 = vst.msk [vmem:[#allocation2] sm:$0xf] %vm37_vm1, %v170_v7  ;;  %80 = vperm.xlu1 %253, %v30_v5  }
  0x21   :  { %64 = vrot.lane.b32.xlu0 %v347_v8, %s298_s30 }
  0x22   :  { %255 = vset.pattern.permute.xlu1 %v299_v10 }
  0x23   :  { %98 = vperm.xlu1 %255, %v30_v5  }
  0x25   :  { %132 = vperm.xlu0 %259, %v30_v5   ;;  %v354_v12 = vld [vmem:[#allocation2] sm:$0xf] }
  0x27   :  { %49 = vrot.lane.b32.xlu1 %v347_v8, %s300_s4 }
  0x28   :  { %256 = vset.pattern.permute.xlu1 %v297_v9 }
  0x29   :  { %260 = vset.pattern.permute.xlu0 %v301_v11 }
  0x2a   :  { %118 = vperm.xlu0 %260, %v30_v5  }
  0x2b   :  { %92 = vperm.xlu1 %256, %v29_v3  }
  0x2e   :  { %126 = vperm.xlu0 %260, %v29_v3  }
  0x2f   :  { %173 = vrot.lane.b32.xlu1 %v354_v12, %s296_s29 }
  0x30   :  { %257 = vset.pattern.permute.xlu1 %v293_v1 }
  0x32   :  { %262 = vset.pattern.permute.xlu0 %v292_v0 }
  0x33   :  { %44 = vperm.xlu0 %262, %v30_v5   ;;  %177 = vrot.lane.b32.xlu1 %v354_v12, %s300_s4 }
  0x37   :  { %68 = vperm.xlu0 %262, %v28_v13   ;;  %86 = vperm.xlu1 %257, %v28_v13  }
  0x3b   :  { %197 = vrot.lane.b32.xlu0 %v354_v12, %s302_s7  ;;  %258 = vset.pattern.permute.xlu1 %v299_v10 }
  0x3c   :  { %112 = vperm.xlu1 %258, %v29_v3  }
  0x3f   :  { %154 = vperm.xlu0 %262, %v32_v14  }
  0x40   :  { %183 = vrot.lane.b32.xlu1 %v354_v12, %s298_s30 }
  0x41   :  { %261 = vset.pattern.permute.xlu1 %v297_v9 }
  0x43   :  { %205 = vrot.lane.b32.xlu0 %v354_v12, %s303_s10 }
  0x44   :  { %106 = vperm.xlu1 %261, %v28_v13  }
  0x47   :  { %211 = vrot.lane.b32.xlu0 %v354_v12, %s304_s1 }
  0x48   :  { %263 = vset.pattern.permute.xlu1 %v305_v15 }
  0x49   :  { %140 = vperm.xlu1 %263, %v30_v5  }
  0x4d   :  { %103 = vrot.lane.b32.xlu1 %v347_v8, %s302_s7 }
  0x4e   :  { %264 = vset.pattern.permute.xlu1 %v292_v0 }
  0x51   :  { %147 = vperm.xlu1 %264, %v31_v16  }
  0x55   :  { %162 = vperm.xlu1 %264, %v33_v17  }
  0x59   :  { %123 = vrot.lane.b32.xlu1 %v347_v8, %s303_s10 }
  0x5d   :  { %137 = vrot.lane.b32.xlu1 %v347_v8, %s304_s1 }
  0x93   :  { %v379_v18 = vpop.permute.xlu1 %53  ;;  %v75_v19 = vpop.permute.xlu0 %74 }
  0x97   :  { %v41_v21 = vpop.permute.xlu0 %40 }
  0x98   :  { %v60_v20 = vpop.permute.xlu1 %59 }
  0x9b   :  { %v65_v23 = vpop.permute.xlu0 %64 }
  0x9c   :  { %v77_v15 = vmul.f32 %v75_v19, %v65_v23 }
  0x9d   :  { %v381_v22 = vpop.permute.xlu1 %80 }
  0xa2   :  { %v383_v24 = vpop.permute.xlu1 %98 }
  0xa3   :  { %v195_v52 = vmul.f32 %v354_v12, %v383_v24 }
  0xa4   :  { %v385_v25 = vpop.permute.xlu0 %132 }
  0xa6   :  { %v50_v26 = vpop.permute.xlu1 %49 }
  0xa7   :  { %v62_v10 = vmul.f32 %v60_v20, %v50_v26  ;;  %v56_v17 = vmul.f32 %v379_v18, %v50_v26 }
  0xa9   :  { %v387_v27 = vpop.permute.xlu0 %118 }
  0xaa   :  { %v93_v28 = vpop.permute.xlu1 %92 }
  0xab   :  { %v193_v45 = vmul.f32 %v354_v12, %v93_v28 }
  0xad   :  { %v389_v29 = vpop.permute.xlu0 %126 }
  0xae   :  { %v174_v30 = vpop.permute.xlu1 %173 }
  0xb2   :  { %v45_v31 = vpop.permute.xlu0 %44  ;;  %v178_v32 = vpop.permute.xlu1 %177 }
  0xb3   :  { %v175_v37 = vmul.f32 %v174_v30, %v45_v31  ;;  %v181_v38 = vmul.f32 %v178_v32, %v60_v20  ;;  %v179_v41 = vmul.f32 %v178_v32, %v379_v18  ;;  %v47_v2 = vmul.f32 %v45_v31, %v41_v21 }
  0xb4   :  { %v83_v32 = vmul.f32 %v381_v22, %v65_v23  ;;  %v78_v18 = vadd.f32 %v77_v15, %v56_v17 }
  0xb5   :  { %v182_v44 = vadd.f32 %v181_v38, %v175_v37  ;;  %v63_v21 = vadd.f32 %v62_v10, %v47_v2 }
  0xb6   :  { %v69_v33 = vpop.permute.xlu0 %68  ;;  %v87_v34 = vpop.permute.xlu1 %86 }
  0xb7   :  { %v71_v58 = vmul.f32 %v69_v33, %v65_v23  ;;  %v89_v59 = vmul.f32 %v87_v34, %v347_v8  ;;  %v191_v63 = vmul.f32 %v354_v12, %v87_v34  ;;  %v84_v26 = vadd.f32 %v83_v32, %v63_v21 }
  0xb9   :  { %v90_v5 = vadd.f32 %v89_v59, %v71_v58 }
  0xba   :  { %v198_v35 = vpop.permute.xlu0 %197 }
  0xbb   :  { %v113_v36 = vpop.permute.xlu1 %112  ;;  %v203_v60 = vmul.f32 %v198_v35, %v387_v27 }
  0xbc   :  { %v201_v50 = vmul.f32 %v198_v35, %v113_v36 }
  0xbe   :  { %v391_v39 = vpop.permute.xlu0 %154 }
  0xbf   :  { %v184_v40 = vpop.permute.xlu1 %183 }
  0xc0   :  { %v187_v42 = vmul.f32 %v184_v40, %v75_v19  ;;  %v189_v43 = vmul.f32 %v184_v40, %v381_v22  ;;  %v185_v61 = vmul.f32 %v184_v40, %v69_v33  ;;  %v95_v33 = vmul.f32 %v93_v28, %v347_v8 }
  0xc1   :  { %v101_v22 = vmul.f32 %v383_v24, %v347_v8 }
  0xc2   :  { %v188_v46 = vadd.f32 %v187_v42, %v179_v41  ;;  %v190_v47 = vadd.f32 %v189_v43, %v182_v44  ;;  %v206_v48 = vpop.permute.xlu0 %205  ;;  %v192_v6 = vadd.f32 %v191_v63, %v185_v61  ;;  %v96_v23 = vadd.f32 %v95_v33, %v78_v18 }
  0xc3   :  { %v107_v49 = vpop.permute.xlu1 %106  ;;  %v207_v54 = vmul.f32 %v206_v48, %v389_v29  ;;  %v209_v7 = vmul.f32 %v206_v48, %v385_v25  ;;  %v102_v38 = vadd.f32 %v101_v22, %v84_v26 }
  0xc4   :  { %v194_v51 = vadd.f32 %v193_v45, %v188_v46  ;;  %v196_v55 = vadd.f32 %v195_v52, %v190_v47  ;;  %v199_v1 = vmul.f32 %v198_v35, %v107_v49 }
  0xc6   :  { %v202_v53 = vadd.f32 %v201_v50, %v194_v51  ;;  %v204_v0 = vadd.f32 %v203_v60, %v196_v55  ;;  %v212_v3 = vpop.permute.xlu0 %211  ;;  %v200_v12 = vadd.f32 %v199_v1, %v192_v6 }
  0xc8   :  { %v208_v56 = vadd.f32 %v207_v54, %v202_v53  ;;  %v141_v57 = vpop.permute.xlu1 %140  ;;  %v210_v11 = vadd.f32 %v209_v7, %v204_v0 }
  0xc9   :  { %v213_v13 = vmul.f32 %v212_v3, %v141_v57 }
  0xca   :  { %v218_v62 = vadd.f32 %v208_v56, %v391_v39 }
  0xcb   :  { %v214_v19 = vadd.f32 %v213_v13, %v210_v11 }
  0xcc   :  { %232 = vst.msk [vmem:[%s440_s3 + $0x10] sm:$0xf] %vm37_vm1, %v218_v62  ;;  %v104_v4 = vpop.permute.xlu1 %103 }
  0xcd   :  { %v109_v9 = vmul.f32 %v107_v49, %v104_v4  ;;  %v115_v34 = vmul.f32 %v113_v36, %v104_v4  ;;  %v121_v28 = vmul.f32 %v387_v27, %v104_v4 }
  0xcf   :  { %v110_v14 = vadd.f32 %v109_v9, %v90_v5  ;;  %v116_v40 = vadd.f32 %v115_v34, %v96_v23  ;;  %v122_v36 = vadd.f32 %v121_v28, %v102_v38 }
  0xd0   :  { %v148_v16 = vpop.permute.xlu1 %147 }
  0xd1   :  { %v150_v30 = vadd.f32 %v148_v16, %v110_v14  ;;  %v215_v31 = vadd.f32 %v200_v12, %v148_v16 }
  0xd3   :  { %151 = vst.msk [vmem:[%s440_s3] sm:$0xf] %vm37_vm1, %v150_v30  ;;  %231 = vst.msk [vmem:[%s440_s3 + $0xc] sm:$0xf] %vm37_vm1, %v215_v31 }
  0xd4   :  { %v163_v20 = vpop.permute.xlu1 %162 }
  0xd5   :  { %v221_v35 = vadd.f32 %v214_v19, %v163_v20 }
  0xd7   :  { %233 = vst.msk [vmem:[%s440_s3 + $0x14] sm:$0xf] %vm37_vm1, %v221_v35 }
  0xd8   :  { %v124_v37 = vpop.permute.xlu1 %123 }
  0xd9   :  { %v129_v41 = vmul.f32 %v389_v29, %v124_v37  ;;  %v135_v42 = vmul.f32 %v385_v25, %v124_v37 }
  0xdb   :  { %v130_v43 = vadd.f32 %v129_v41, %v116_v40  ;;  %v136_v45 = vadd.f32 %v135_v42, %v122_v36 }
  0xdc   :  { %v138_v44 = vpop.permute.xlu1 %137 }
  0xdd   :  { %v157_v8 = vadd.f32 %v391_v39, %v130_v43  ;;  %v143_v24 = vmul.f32 %v141_v57, %v138_v44 }
  0xdf   :  { %229 = vst.msk [vmem:[%s440_s3 + $0x4] sm:$0xf] %vm37_vm1, %v157_v8  ;;  %v144_v27 = vadd.f32 %v143_v24, %v136_v45 }
  0xe1   :  { %v165_v46 = vadd.f32 %v163_v20, %v144_v27 }
  0xe3   :  { %230 = vst.msk [vmem:[%s440_s3 + $0x8] sm:$0xf] %vm37_vm1, %v165_v46 }
  0xe4   :  { %228 = vsyncpa [#allocation4], 1 }

</bundles_post_ra>
